<compile_context>
chip_gen: v7x
topology: tpu7x:2x2x1
jax: 0.10.0
libtpu: 0.0.40
codegen_flags: <defaults>
</compile_context>

<pallas_src>
import functools

import jax
import jax.numpy as jnp
import numpy as np
from jax.experimental import pallas as pl
from jax.experimental.pallas import tpu as pltpu

_LANE = 128


def _round_up(a, m):
    return ((a + m - 1) // m) * m


def _mean_and_conv_kernel(x_ref, w_ref, b_ref, o_ref, *,
                          c_in, c_out, l_out, ksize, stride, b_t, down_idx):
    # x_ref: (C_in, L, B_T)            -- lane-dense batch tile
    # w_ref: (C_out + C_in, K*C_in)    -- conv weight + identity block (downsample rows)
    # b_ref: (C_out + C_in, 1)         -- conv bias + zeros
    # o_ref: (C_out + C_in, L_out*B_T) -- column index = t*B_T + b (B_T % 128 == 0)
    # Gather the K conv taps once: strided loads along the second-minor (time/sublane) axis.
    if stride == 1:
        taps = [x_ref[:, pl.ds(k, l_out), :] for k in range(ksize)]
    else:
        taps = [x_ref[:, pl.ds(k, l_out, stride=stride), :] for k in range(ksize)]
    cols = taps[0] if ksize == 1 else jnp.concatenate(taps, axis=0)   # (K*C_in, L_out, B_T)
    # Lane-chunk-preserving flatten: column index = t*B_T + b.
    cols = cols.reshape(ksize * c_in, l_out * b_t)
    # One fused MXU matmul writes conv rows, downsample rows and bias in a single store.
    acc = jnp.dot(w_ref[...], cols, preferred_element_type=jnp.float32) + b_ref[...]
    o_ref[...] = acc.astype(o_ref.dtype)
    if down_idx is not None:
        # Rare path (L % stride >= 2): exact PyTorch nearest indices differ from t*stride;
        # gather them (static single-row slices) and overwrite the downsample rows.
        down = jnp.concatenate([x_ref[:, pl.ds(int(i), 1), :] for i in down_idx], axis=1)
        o_ref[c_out:, :] = down.reshape(c_in, l_out * b_t).astype(o_ref.dtype)


def _vmem_capacity_bytes():
    try:
        return int(pltpu.get_tpu_info().vmem_capacity_bytes)
    except Exception:
        return 64 << 20     # v7x per-core VMEM; conservative fallback for v5e/v6e (128 MiB)


def _step_vmem_bytes(b_t, *, c_in, c_out, length, l_out, ksize, itemsize):
    """Per-grid-step VMEM bytes including (8,128) tile padding and in-kernel temporaries."""
    sub = max(8, 8 * (4 // max(itemsize, 1)))     # sublane tile: 8 (f32) / 16 (bf16) / 32 (i8)
    c_tot = c_out + c_in
    in_slab = c_in * _round_up(length, sub) * b_t * itemsize               # (C_in, L, B_T)
    out_slab = _round_up(c_tot, sub) * l_out * b_t * itemsize              # (C_tot, L_out*B_T)
    cols = ksize * c_in * _round_up(l_out, sub) * b_t * itemsize           # tap gather/concat
    cols_flat = _round_up(ksize * c_in, sub) * l_out * b_t * itemsize      # flattened copy
    acc = _round_up(c_tot, sub) * l_out * b_t * 4                          # f32 matmul result
    w_and_bias = 2 * _round_up(c_tot, sub) * _round_up(ksize * c_in, _LANE) * 4
    return 2 * in_slab + 2 * out_slab + cols + cols_flat + acc + w_and_bias


def _pick_batch_tile(n, vmem_budget, step_bytes):
    """Largest lane-dense (multiple-of-128) batch tile within budget; for large N keep >= 2
    grid steps so v7x's second TensorCore has work (no-op on 1-TC v5e/v6e)."""
    bt_cap = _round_up(n, _LANE)
    if n > _LANE:
        bt_cap = min(bt_cap, _round_up(-(-n // 2), _LANE))
    b_t = _LANE
    while b_t + _LANE <= bt_cap and step_bytes(b_t + _LANE) <= vmem_budget:
        b_t += _LANE
    return b_t


def mean_and_conv(x, weight, bias, *, stride, batch_tile=None):
    """x: (N, C_in, L); weight: (C_out, C_in, K); bias: (C_out,) -> (N, C_out+C_in, L_out)."""
    n, c_in, length = x.shape
    c_out, _, ksize = weight.shape
    c_tot = c_out + c_in
    l_out = (length - ksize) // stride + 1
    interp_len = length // stride                       # nearest-interpolate output length
    assert l_out >= 1
    assert l_out <= interp_len, "cat() in the original module requires L_out <= floor(L/stride)"

    # Exact PyTorch nearest-neighbour source indices; usually exactly t*stride.
    down_idx = tuple(int(min((t * length) // interp_len, length - 1)) for t in range(l_out))
    uniform = all(i == t * stride for t, i in enumerate(down_idx))

    itemsize = x.dtype.itemsize
    step_bytes = functools.partial(_step_vmem_bytes, c_in=c_in, c_out=c_out, length=length,
                                   l_out=l_out, ksize=ksize, itemsize=itemsize)
    cap = _vmem_capacity_bytes()
    budget = max(4 << 20, min(cap // 5, 24 << 20))
    if batch_tile is None:
        b_t = _pick_batch_tile(n, budget, step_bytes)
    else:
        b_t = _round_up(int(batch_tile), _LANE)
    need = step_bytes(b_t)
    vmem_limit = int(min(cap // 2, max(need + (4 << 20), 16 << 20)))

    n_tiles = -(-n // b_t)
    n_pad = n_tiles * b_t
    if n_pad != n:
        x = jnp.pad(x, ((0, n_pad - n), (0, 0), (0, 0)))

    # Layout plumbing (wrapper): batch tile onto the lane axis -> (n_tiles, C_in, L, B_T).
    x_t = jnp.transpose(x.reshape(n_tiles, b_t, c_in, length), (0, 2, 3, 1))
    # Conv weight -> (C_out, K*C_in), column = k*C_in + ci (matches im2col row order), plus an
    # identity block selecting tap-0 rows so the downsample comes out of the same matmul.
    w_conv = jnp.transpose(weight, (0, 2, 1)).reshape(c_out, ksize * c_in)
    w_down = jnp.pad(jnp.eye(c_in, dtype=w_conv.dtype), ((0, 0), (0, (ksize - 1) * c_in)))
    w_full = jnp.concatenate([w_conv, w_down], axis=0).astype(x.dtype)       # (C_tot, K*C_in)
    b_full = jnp.concatenate([bias.astype(jnp.float32),
                              jnp.zeros((c_in,), jnp.float32)]).reshape(c_tot, 1)

    kern = functools.partial(
        _mean_and_conv_kernel,
        c_in=c_in, c_out=c_out, l_out=l_out, ksize=ksize, stride=stride, b_t=b_t,
        down_idx=None if uniform else down_idx)

    out = pl.pallas_call(
        kern,
        out_shape=jax.ShapeDtypeStruct((n_tiles, c_tot, l_out * b_t), x.dtype),
        grid=(n_tiles,),
        in_specs=[
            pl.BlockSpec((None, c_in, length, b_t), lambda i: (i, 0, 0, 0)),  # lane-dense x slab
            pl.BlockSpec((c_tot, ksize * c_in), lambda i: (0, 0)),            # fused weight
            pl.BlockSpec((c_tot, 1), lambda i: (0, 0)),                       # fused bias
        ],
        out_specs=pl.BlockSpec((None, c_tot, l_out * b_t), lambda i: (i, 0, 0)),
        compiler_params=pltpu.CompilerParams(
            dimension_semantics=("parallel",),
            vmem_limit_bytes=vmem_limit),
    )(x_t, w_full, b_full)

    # Un-fold the lane-dense slab: (n_tiles, C_tot, L_out*B_T) -> (N, C_tot, L_out).
    out = out.reshape(n_tiles, c_tot, l_out, b_t)
    out = jnp.transpose(out, (0, 3, 1, 2)).reshape(n_pad, c_tot, l_out)
    return out[:n]


def _reference(x, weight, bias, stride):
    conv = jax.lax.conv_general_dilated(
        x, weight, window_strides=(stride,), padding="VALID",
        dimension_numbers=("NCH", "OIH", "NCH"),
    ) + bias[None, :, None]
    l_out = conv.shape[-1]
    length = x.shape[-1]
    interp_len = length // stride
    idx = np.minimum((np.arange(l_out) * length) // interp_len, length - 1)
    down = x[:, :, idx]
    return jnp.concatenate([conv, down], axis=1)


if __name__ == "__main__":
    key = jax.random.PRNGKey(0)

    # Case 1: shapes consistent with the module: Conv1d(inp=4, output=8, kernel=3, stride=2).
    N, C_IN, L, C_OUT, K, STRIDE = 2, 4, 16, 8, 3, 2
    kx, kw, kb = jax.random.split(key, 3)
    x = jax.random.normal(kx, (N, C_IN, L), dtype=jnp.float32)
    w = jax.random.normal(kw, (C_OUT, C_IN, K), dtype=jnp.float32) * 0.1
    b = jax.random.normal(kb, (C_OUT,), dtype=jnp.float32) * 0.1
    out = jax.block_until_ready(mean_and_conv(x, w, b, stride=STRIDE))
    assert out.shape == (N, C_OUT + C_IN, (L - K) // STRIDE + 1), out.shape
    np.testing.assert_allclose(np.asarray(out), np.asarray(_reference(x, w, b, STRIDE)),
                               rtol=1e-4, atol=1e-4)

    # Case 2: L % stride >= 2 exercises the exact nearest-neighbour index (rare) path.
    N2, C_IN2, L2, C_OUT2, K2, STRIDE2 = 3, 4, 17, 6, 3, 3
    kx2, kw2, kb2 = jax.random.split(jax.random.fold_in(key, 1), 3)
    x2 = jax.random.normal(kx2, (N2, C_IN2, L2), dtype=jnp.float32)
    w2 = jax.random.normal(kw2, (C_OUT2, C_IN2, K2), dtype=jnp.float32) * 0.1
    b2 = jax.random.normal(kb2, (C_OUT2,), dtype=jnp.float32) * 0.1
    out2 = jax.block_until_ready(mean_and_conv(x2, w2, b2, stride=STRIDE2))
    assert out2.shape == (N2, C_OUT2 + C_IN2, (L2 - K2) // STRIDE2 + 1), out2.shape
    np.testing.assert_allclose(np.asarray(out2), np.asarray(_reference(x2, w2, b2, STRIDE2)),
                               rtol=1e-4, atol=1e-4)

    print("KERNEL_OK")
</pallas_src>

<mosaic_0001>
module attributes {stable_mosaic.version = 11 : i64} {
  func.func @_mean_and_conv_kernel(%arg0: i32, %arg1: memref<1x4x16x128xf32, #tpu.memory_space<vmem>>, %arg2: memref<12x12xf32, #tpu.memory_space<vmem>>, %arg3: memref<12x1xf32, #tpu.memory_space<vmem>>, %arg4: memref<1x12x896xf32, #tpu.memory_space<vmem>>) attributes {dimension_semantics = [#tpu.dimension_semantics<parallel>], iteration_bounds = array<i64: 1>, scalar_prefetch = 0 : i64, scratch_operands = 0 : i64, tpu.core_type = #tpu.core_type<tc>, window_params = [{transform_indices = @transform_0, window_bounds = array<i64: 1, 4, 16, 128>}, {pipeline_mode = #tpu.pipeline_mode<synchronous>, transform_indices = @transform_1, window_bounds = array<i64: 12, 12>}, {pipeline_mode = #tpu.pipeline_mode<synchronous>, transform_indices = @transform_2, window_bounds = array<i64: 12, 1>}, {transform_indices = @transform_3, window_bounds = array<i64: 1, 12, 896>}]} {
    %c0 = arith.constant 0 : index
    %c0_0 = arith.constant 0 : index
    %c0_1 = arith.constant 0 : index
    %c0_2 = arith.constant 0 : index
    %0 = tpu.strided_load %arg1[%c0, %c0_0, %c0_1, %c0_2] {strides = array<i32: 1, 1, 2, 1>} : memref<1x4x16x128xf32, #tpu.memory_space<vmem>>, vector<1x4x7x128xf32>
    %1 = vector.shape_cast %0 : vector<1x4x7x128xf32> to vector<4x7x128xf32>
    %c0_3 = arith.constant 0 : index
    %c0_4 = arith.constant 0 : index
    %c1 = arith.constant 1 : index
    %c0_5 = arith.constant 0 : index
    %2 = tpu.strided_load %arg1[%c0_3, %c0_4, %c1, %c0_5] {strides = array<i32: 1, 1, 2, 1>} : memref<1x4x16x128xf32, #tpu.memory_space<vmem>>, vector<1x4x7x128xf32>
    %3 = vector.shape_cast %2 : vector<1x4x7x128xf32> to vector<4x7x128xf32>
    %c0_6 = arith.constant 0 : index
    %c0_7 = arith.constant 0 : index
    %c2 = arith.constant 2 : index
    %c0_8 = arith.constant 0 : index
    %4 = tpu.strided_load %arg1[%c0_6, %c0_7, %c2, %c0_8] {strides = array<i32: 1, 1, 2, 1>} : memref<1x4x16x128xf32, #tpu.memory_space<vmem>>, vector<1x4x7x128xf32>
    %5 = vector.shape_cast %4 : vector<1x4x7x128xf32> to vector<4x7x128xf32>
    %6 = tpu.concatenate %1, %3, %5 in 0 : vector<4x7x128xf32>, vector<4x7x128xf32>, vector<4x7x128xf32> -> vector<12x7x128xf32>
    %7 = vector.shape_cast %6 : vector<12x7x128xf32> to vector<12x896xf32>
    %c0_9 = arith.constant 0 : index
    %c0_10 = arith.constant 0 : index
    %8 = vector.load %arg2[%c0_9, %c0_10] : memref<12x12xf32, #tpu.memory_space<vmem>>, vector<12x12xf32>
    %cst = arith.constant dense<0.000000e+00> : vector<12x896xf32>
    %9 = tpu.matmul %8, %7, %cst {dimension_numbers = #tpu.dot_dimension_numbers<[1], [0], [0], [1], [0, 0, 1, 1], [], []>} : vector<12x12xf32>, vector<12x896xf32>, vector<12x896xf32> -> vector<12x896xf32>
    %c0_11 = arith.constant 0 : index
    %c0_12 = arith.constant 0 : index
    %10 = vector.load %arg3[%c0_11, %c0_12] : memref<12x1xf32, #tpu.memory_space<vmem>>, vector<12x1xf32>
    %11 = vector.broadcast %10 : vector<12x1xf32> to vector<12x896xf32>
    %12 = arith.addf %9, %11 : vector<12x896xf32>
    %c0_13 = arith.constant 0 : index
    %c0_14 = arith.constant 0 : index
    %c0_15 = arith.constant 0 : index
    %13 = vector.load %arg4[%c0_13, %c0_14, %c0_15] : memref<1x12x896xf32, #tpu.memory_space<vmem>>, vector<1x12x896xf32>
    %14 = vector.shape_cast %13 : vector<1x12x896xf32> to vector<12x896xf32>
    %15 = vector.shape_cast %12 : vector<12x896xf32> to vector<1x12x896xf32>
    tpu.vector_store %arg4[%c0_13, %c0_14, %c0_15], %15 {strides = array<i32>} : memref<1x12x896xf32, #tpu.memory_space<vmem>>, vector<1x12x896xf32>,
    return
  }
  func.func @transform_0(%arg0: i32) -> (i32, i32, i32, i32) {
    %c0_i32 = arith.constant 0 : i32
    %c0_i32_0 = arith.constant 0 : i32
    %c0_i32_1 = arith.constant 0 : i32
    %c0_i32_2 = arith.constant 0 : i32
    return %arg0, %c0_i32, %c0_i32_0, %c0_i32_1 : i32, i32, i32, i32
  }
  func.func @transform_1(%arg0: i32) -> (i32, i32) {
    %c0_i32 = arith.constant 0 : i32
    %c0_i32_0 = arith.constant 0 : i32
    %c0_i32_1 = arith.constant 0 : i32
    return %c0_i32, %c0_i32_0 : i32, i32
  }
  func.func @transform_2(%arg0: i32) -> (i32, i32) {
    %c0_i32 = arith.constant 0 : i32
    %c0_i32_0 = arith.constant 0 : i32
    %c0_i32_1 = arith.constant 0 : i32
    return %c0_i32, %c0_i32_0 : i32, i32
  }
  func.func @transform_3(%arg0: i32) -> (i32, i32, i32) {
    %c0_i32 = arith.constant 0 : i32
    %c0_i32_0 = arith.constant 0 : i32
    %c0_i32_1 = arith.constant 0 : i32
    return %arg0, %c0_i32, %c0_i32_0 : i32, i32, i32
  }
}

</mosaic_0001>

<bundles_post_ra>
// kernel: tpu_custom_call.1
= control target key start
LH: loop header
LB: loop body
LE: loop exit
PB: predicated region body
PF: predicated region fallthrough
CT: control target
= control target key end

     0   :  { %8 = vsyncpa [#allocation3], 0  ;;  %s704_s12 = smov [#allocation2]   ;;  %s850_s0 = inlined_call_operand.hbm [shape: f32[1,4,16,128], index: 0, kind: input, shape index: {}]   ;;  %s851_s1 = inlined_call_operand.vmem [shape: f32[12,12], index: 1, kind: input, shape index: {}]   ;;  %s852_s2 = inlined_call_operand.vmem [shape: f32[12,1], index: 2, kind: input, shape index: {}]   ;;  %s853_s3 = inlined_call_operand.vmem [shape: f32[1,12,896], index: 3, kind: output, shape index: {}]  }
   0x1   :  { %s14_s13 = sshll.u32 %s704_s12, 4  ;;  %s680_s16 = scalar_lea.hbm %s850_s0, 1024  ;;  %s15_s13 = int_to_ptr.vmem [resolvable:$true] %s14_s13 }
   0x2   :  { %p681_p0 = scmp.ne.s32.totalorder %s850_s0, %s680_s16  ;;  %p684_p1 = scmp.lt.u32.totalorder %s680_s16, %s850_s0 }
   0x4   :  { %p686_p2 = pnand %p684_p1, %p681_p0 }
   0x6   :  { %689 = shalt.err (!%p686_p2)
}
   0x7   :  { %s690_s21 = scalar_lea.vmem %s15_s13, 1024  ;;  %p695_p4 = scmp.lt.s32.totalorder %s15_s13, %s15_s13 }
   0x8   :  { %p691_p3 = scmp.ne.s32.totalorder %s15_s13, %s690_s21  ;;  %p696_p5 = scmp.lt.s32.totalorder %s690_s21, %s690_s21 }
   0xa   :  { %p697_p6 = por %p696_p5, %p695_p4 }
   0xc   :  { %p698_p7 = pnand %p697_p6, %p691_p3 }
   0xe   :  { %701 = shalt.err (!%p698_p7)
}
   0xf   :  { %s705_s22 = smov 128   ;;  %s706_s23 = smov 8  }
  0x10   :  { %20 = dma.hbm_to_vmem [thread:$0]  %s850_s0, 1024, %s15_s13, [#allocation3], %s705_s22, %s705_s22, %s706_s23  }
  0x11   :  { %702 = dma.done.wait [#allocation3], 1024  }
  0x12   :  { %703 = vsyncadd [#allocation3], 4294966272  ;;  %v56_v0 = vlaneseq  ;;  %v707_v1 = vmov 1983009808   ;;  %v708_v3 = vmov 1934713408  }
  0x13   :  { %v54_v2 = vunpack.c.l.s4 %v707_v1  ;;  %v118_v4 = vunpack.c.l.s4 %v708_v3  ;;  %v709_v5 = vmov 0.0   ;;  %v710_v8 = vmov 0   ;;  %v28_v10 = vld [vmem:[#allocation2] ss:$2 sm:$0x7f] }
  0x14   :  { %360 = vmatprep.mubr.f32.mxu0 %v709_v5  ;;  %437 = vmatprep.mubr.f32.mxu1 %v709_v5  ;;  %v57_v7 = vshrl.u32 %v56_v0, 7  ;;  %v30_v11 = vld [vmem:[#allocation2 + $0x10] ss:$2 sm:$0x7f]  ;;  %vm274_vm0 = vcmask 1043456   ;;  %v255_v40 = vld [vmem:[%s852_s2] sm:$0xff] }
  0x15   :  { %v55_v6 = vunpack.c.0.s8 %v54_v2  ;;  %679 = vset.pattern.permute.xlu0 %v710_v8  ;;  %v119_v9 = vunpack.c.0.s8 %v118_v4  ;;  %v32_v13 = vld [vmem:[#allocation2 + $0x20] ss:$2 sm:$0x7f]  ;;  %v34_v14 = vld [vmem:[#allocation2 + $0x30] ss:$2 sm:$0x7f] }
  0x16   :  { %v36_v15 = vld [vmem:[#allocation2 + $0x1] ss:$2 sm:$0x7f]  ;;  %v38_v16 = vld [vmem:[#allocation2 + $0x11] ss:$2 sm:$0x7f]  ;;  %v51_v17 = vcombine.low %v28_v10, %v32_v13  ;;  %v52_v18 = vcombine.high %v28_v10, %v32_v13  ;;  %v67_v19 = vcombine.low %v30_v11, %v34_v14  ;;  %v68_v20 = vcombine.high %v30_v11, %v34_v14  ;;  %259 = vperm.xlu0 %679, %v255_v40  }
  0x17   :  { %v58_v12 = vsub.s32 %v55_v6, %v57_v7  ;;  %v40_v21 = vld [vmem:[#allocation2 + $0x21] ss:$2 sm:$0x7f]  ;;  %v42_v22 = vld [vmem:[#allocation2 + $0x31] ss:$2 sm:$0x7f]  ;;  %v746_v23 = vsub.s32 %v119_v9, %v57_v7 }
  0x18   :  { %v44_v24 = vld [vmem:[#allocation2 + $0x2] ss:$2 sm:$0x7f]  ;;  %v46_v25 = vld [vmem:[#allocation2 + $0x12] ss:$2 sm:$0x7f]  ;;  %v83_v28 = vcombine.low %v36_v15, %v40_v21  ;;  %v84_v29 = vcombine.high %v36_v15, %v40_v21  ;;  %v99_v32 = vcombine.low %v38_v16, %v42_v22  ;;  %v100_v33 = vcombine.high %v38_v16, %v42_v22 }
  0x19   :  { %v59_v26 = vrot.slane %v51_v17, %v58_v12  ;;  %v75_v27 = vrot.slane %v67_v19, %v58_v12  ;;  %v48_v30 = vld [vmem:[#allocation2 + $0x22] ss:$2 sm:$0x7f]  ;;  %v50_v31 = vld [vmem:[#allocation2 + $0x32] ss:$2 sm:$0x7f]  ;;  %v66_v34 = vrot.slane %v52_v18, %v58_v12  ;;  %v82_v35 = vrot.slane %v68_v20, %v58_v12 }
  0x1a   :  { %v91_v36 = vrot.slane %v83_v28, %v58_v12  ;;  %v186_v38 = vcombine.low %v44_v24, %v48_v30  ;;  %v187_v39 = vcombine.high %v44_v24, %v48_v30  ;;  %v107_v41 = vrot.slane %v99_v32, %v58_v12  ;;  %v256_v49 = vld [vmem:[%s852_s2 + $0x8] sm:$0xf] }
  0x1b   :  { %v115_v37 = vcombine.low %v59_v26, %v75_v27  ;;  %v202_v42 = vcombine.low %v46_v25, %v50_v31  ;;  %v203_v43 = vcombine.high %v46_v25, %v50_v31  ;;  %v116_v44 = vcombine.high %v59_v26, %v75_v27  ;;  %264 = vperm.xlu0 %679, %v256_v49   ;;  %v253_v27 = vld [vmem:[%s851_s1] sm:$0xff]  ;;  %v254_v30 = vld [vmem:[%s851_s1 + $0x8] sm:$0xf] }
  0x1c   :  { %v194_v46 = vrot.slane %v186_v38, %v58_v12  ;;  %v98_v47 = vrot.slane %v84_v29, %v58_v12  ;;  %v114_v48 = vrot.slane %v100_v33, %v58_v12  ;;  %v147_v50 = vcombine.low %v91_v36, %v107_v41 }
  0x1d   :  { %v123_v45 = vrot.slane %v115_v37, %v746_v23  ;;  %v210_v51 = vrot.slane %v202_v42, %v58_v12  ;;  %v130_v52 = vrot.slane %v116_v44, %v746_v23  ;;  %v148_v53 = vcombine.high %v91_v36, %v107_v41 }
  0x1e   :  { %v131_v54 = vcombine.low %v66_v34, %v82_v35  ;;  %v163_v55 = vcombine.low %v98_v47, %v114_v48  ;;  %v201_v56 = vrot.slane %v187_v39, %v58_v12  ;;  %v217_v57 = vrot.slane %v203_v43, %v58_v12 }
  0x1f   :  { %v155_v58 = vrot.slane %v147_v50, %v746_v23  ;;  %v218_v59 = vcombine.low %v194_v46, %v210_v51  ;;  %v162_v60 = vrot.slane %v148_v53, %v746_v23  ;;  %v219_v61 = vcombine.high %v194_v46, %v210_v51 }
  0x20   :  { %v139_v62 = vrot.slane %v131_v54, %v746_v23  ;;  %v171_v63 = vrot.slane %v163_v55, %v746_v23  ;;  %v234_v0 = vcombine.low %v201_v56, %v217_v57  ;;  %v132_v1 = vcombine.high %v66_v34, %v82_v35 }
  0x21   :  { %v180_v2 = vcombine.high %v123_v45, %v155_v58  ;;  %v226_v3 = vrot.slane %v218_v59, %v746_v23  ;;  %v179_v4 = vcombine.low %v123_v45, %v155_v58  ;;  %v182_v6 = vcombine.high %v130_v52, %v162_v60 }
  0x22   :  { %v233_v7 = vrot.slane %v219_v61, %v746_v23  ;;  %v181_v8 = vcombine.low %v130_v52, %v162_v60  ;;  %v183_v9 = vcombine.low %v139_v62, %v171_v63  ;;  %v184_v12 = vcombine.high %v139_v62, %v171_v63 }
  0x23   :  { %v243_v10 = vcombine.high %v226_v3, %v709_v5  ;;  %v650_v11 = vpack.c.bf16 %v226_v3, %v179_v4  ;;  %v242_v13 = vrot.slane %v234_v0, %v746_v23  ;;  %vm711_vm1 = vmmov 1  }
  0x24   :  { %vm765_vm2 = vmpackc.low %vm274_vm0, %vm711_vm1  ;;  %v244_v15 = vcombine.high %v233_v7, %v709_v5  ;;  %v146_v16 = vrot.slane %v132_v1, %v746_v23  ;;  %v164_v17 = vcombine.high %v98_v47, %v114_v48  ;;  %v235_v18 = vcombine.high %v201_v56, %v217_v57 }
  0x25   :  { %v647_v19 = vpack.c.bf16 %v243_v10, %v180_v2  ;;  %v656_v20 = vpack.c.bf16 %v233_v7, %v181_v8  ;;  %v245_v21 = vcombine.high %v242_v13, %v709_v5  ;;  %vm267_vm3 = vcmask 97280  }
  0x26   :  { %v653_v22 = vpack.c.bf16 %v244_v15, %v182_v6  ;;  %v178_v24 = vrot.slane %v164_v17, %v746_v23  ;;  %v252_v25 = vrot.slane %v235_v18, %v746_v23  ;;  %v662_v28 = vpack.c.bf16 %v242_v13, %v183_v9 }
  0x27   :  { %649 = vmatprep.subr.msk.bf16.mxu0 %vm765_vm2, %v647_v19  ;;  %v659_v26 = vpack.c.bf16 %v245_v21, %v184_v12 }
  0x28   :  { %652 = vmatpush1.bf16.msk.msra.mxu0 %vm765_vm2, %v650_v11  ;;  %655 = vmatprep.subr.msk.bf16.mxu1 %vm765_vm2, %v653_v22  ;;  %v185_v29 = vcombine.low %v146_v16, %v178_v24 }
  0x29   :  { %658 = vmatpush1.bf16.msk.msra.mxu1 %vm765_vm2, %v656_v20  ;;  %661 = vmatprep.subr.msk.bf16.mxu0 %vm765_vm2, %v659_v26 }
  0x2a   :  { %v665_v23 = vpack.c.bf16 %v252_v25, %v185_v29 }
  0x2b   :  { %623 = vmatmul.mubr.msk.f32.vlgmr.msra.gmra.mrb[0].mxu0 %vm267_vm3, %v253_v27 }
  0x2c   :  { %627 = vmatmul.mubr.msk.f32.vlgmr.msra.gmra.mrb[0].mxu1 %vm267_vm3, %v253_v27  ;;  %664 = vmatpush1.bf16.msk.msra.mxu0 %vm765_vm2, %v662_v28 }
  0x2d   :  { %366 = vmatprep.mubr.f32.mxu0 %v709_v5  ;;  %443 = vmatprep.mubr.f32.mxu1 %v709_v5 }
  0x2e   :  { %667 = vmatprep.subr.msk.bf16.mxu1 %vm765_vm2, %v665_v23 }
  0x2f   :  { %624 = vmatmul.mubr.msk.f32.gmra.mrb[2].mxu0 %vm267_vm3, %v254_v30  ;;  %670 = vmatpush3.bf16.msk.msra.mxu1 %vm765_vm2, %v665_v23 }
  0x30   :  { %628 = vmatmul.mubr.msk.f32.gmra.mrb[2].mxu1 %vm267_vm3, %v254_v30  ;;  %514 = vmatprep.mubr.f32.mxu0 %v709_v5 }
  0x31   :  { %644 = vmatprep.mubr.msk.f32.mxu1 %vm267_vm3, %v253_v27 }
  0x33   :  { %631 = vmatmul.mubr.msk.f32.vlgmr.msra.gmra.mrb[4].mxu0 %vm267_vm3, %v253_v27 }
  0x34   :  { %645 = vmatmul.mubr.msk.f32.vlgmr.msra.gmra.mrb[4].mxu1 %vm267_vm3, %v254_v30  ;;  %520 = vmatprep.mubr.f32.mxu0 %v709_v5 }
  0x37   :  { %632 = vmatmul.mubr.msk.f32.gmra.mrb[6].mxu0 %vm267_vm3, %v254_v30 }
  0x95   :  { %v260_v31 = vpop.permute.xlu0 %259 }
  0x9a   :  { %v265_v38 = vpop.permute.xlu0 %264 }
  0xfe   :  { %v362_v32 = vpop.f32.mrb[0].mxu0 }
  0xff   :  { %v363_v33 = vadd.f32 %v362_v32, %v260_v31  ;;  %v364_v34 = vpop.f32.mrb[1].mxu0  ;;  %v439_v35 = vpop.f32.mrb[0].mxu1 }
 0x100   :  { %v365_v36 = vadd.f32 %v364_v34, %v260_v31  ;;  %v440_v37 = vadd.f32 %v439_v35, %v260_v31  ;;  %v441_v39 = vpop.f32.mrb[1].mxu1 }
 0x101   :  { %602 = vst [vmem:[%s853_s3] sm:$0xff] %v363_v33  ;;  %v442_v40 = vadd.f32 %v441_v39, %v260_v31 }
 0x102   :  { %603 = vst [vmem:[%s853_s3 + $0x8] sm:$0xff] %v365_v36  ;;  %v368_v5 = vpop.f32.mrb[2].mxu0  ;;  %604 = vst [vmem:[%s853_s3 + $0x10] sm:$0xff] %v440_v37 }
 0x103   :  { %v369_v41 = vadd.f32 %v368_v5, %v265_v38  ;;  %v370_v42 = vpop.f32.mrb[3].mxu0  ;;  %605 = vst [vmem:[%s853_s3 + $0x18] sm:$0xff] %v442_v40  ;;  %v445_v43 = vpop.f32.mrb[2].mxu1 }
 0x104   :  { %v371_v44 = vadd.f32 %v370_v42, %v265_v38  ;;  %v446_v45 = vadd.f32 %v445_v43, %v265_v38  ;;  %v447_v46 = vpop.f32.mrb[3].mxu1 }
 0x105   :  { %609 = vst [vmem:[%s853_s3 + $0x38] sm:$0xf] %v369_v41  ;;  %v448_v47 = vadd.f32 %v447_v46, %v265_v38 }
 0x106   :  { %610 = vst [vmem:[%s853_s3 + $0x40] sm:$0xf] %v371_v44  ;;  %611 = vst [vmem:[%s853_s3 + $0x48] sm:$0xf] %v446_v45  ;;  %v516_v48 = vpop.f32.mrb[4].mxu0 }
 0x107   :  { %612 = vst [vmem:[%s853_s3 + $0x50] sm:$0xf] %v448_v47  ;;  %v517_v49 = vadd.f32 %v516_v48, %v260_v31  ;;  %v518_v50 = vpop.f32.mrb[5].mxu0  ;;  %v646_v51 = vpop.f32.mrb[4].mxu1 }
 0x108   :  { %v519_v52 = vadd.f32 %v518_v50, %v260_v31  ;;  %v599_v53 = vadd.f32 %v646_v51, %v265_v38  ;;  %v593_v54 = vpop.f32.mrb[5].mxu1 }
 0x109   :  { %606 = vst [vmem:[%s853_s3 + $0x20] sm:$0xff] %v517_v49  ;;  %v594_v55 = vadd.f32 %v593_v54, %v260_v31 }
 0x10a   :  { %607 = vst [vmem:[%s853_s3 + $0x28] sm:$0xff] %v519_v52  ;;  %615 = vst [vmem:[%s853_s3 + $0x68] sm:$0xf] %v599_v53  ;;  %v522_v56 = vpop.f32.mrb[6].mxu0 }
 0x10b   :  { %608 = vst [vmem:[%s853_s3 + $0x30] sm:$0xff] %v594_v55  ;;  %v523_v57 = vadd.f32 %v522_v56, %v265_v38  ;;  %v524_v58 = vpop.f32.mrb[7].mxu0 }
 0x10c   :  { %v525_v59 = vadd.f32 %v524_v58, %v265_v38 }
 0x10d   :  { %613 = vst [vmem:[%s853_s3 + $0x58] sm:$0xf] %v523_v57 }
 0x10e   :  { %614 = vst [vmem:[%s853_s3 + $0x60] sm:$0xf] %v525_v59 }
 0x10f   :  { %620 = vsyncpa [#allocation3], 1 }

</bundles_post_ra>
